<compile_context>
chip_gen: v5e
topology: v5e:2x2
jax: 0.10.0
libtpu: 0.0.40
codegen_flags: <defaults>
</compile_context>

<pallas_src>
import functools

import jax
import jax.numpy as jnp
from jax.experimental import pallas as pl
from jax.experimental.pallas import tpu as pltpu


def _round_up(x, m):
    return ((x + m - 1) // m) * m


def classblock_kernel(x_ref, wt_ref, b_ref, o_ref):
    # LeakyReLU(0.1) on the VPU, matmul on the MXU (f32 accumulate),
    # bias add fused on the VPU (free filler under the MXU).
    x = x_ref[...]
    x = jnp.where(x >= 0, x, jnp.asarray(0.1, x.dtype) * x)   # nn.LeakyReLU(0.1)
    # nn.Dropout(p=0.0) -> identity, nothing to do.
    y = jnp.dot(x, wt_ref[...], preferred_element_type=jnp.float32)
    o_ref[...] = (y + b_ref[...]).astype(o_ref.dtype)


@functools.partial(jax.jit, static_argnames=("tm", "tn", "out_rows", "out_cols"))
def _class_block_pallas(x_pad, wt_pad, b_pad, *, tm, tn, out_rows, out_cols):
    Bp, D = x_pad.shape
    Cp = wt_pad.shape[1]
    grid = (Bp // tm, Cp // tn)

    cost = pl.CostEstimate(
        flops=2 * Bp * D * Cp,
        transcendentals=0,
        bytes_accessed=(x_pad.size * x_pad.dtype.itemsize
                        + wt_pad.size * wt_pad.dtype.itemsize
                        + b_pad.size * b_pad.dtype.itemsize
                        + Bp * Cp * 4),
    )

    out = pl.pallas_call(
        classblock_kernel,
        out_shape=jax.ShapeDtypeStruct((Bp, Cp), jnp.float32),
        grid_spec=pltpu.PrefetchScalarGridSpec(
            num_scalar_prefetch=0,
            grid=grid,
            in_specs=[
                pl.BlockSpec((tm, D), lambda i, j: (i, 0)),   # x tile (whole K resident)
                pl.BlockSpec((D, tn), lambda i, j: (0, j)),   # W^T tile
                pl.BlockSpec((1, tn), lambda i, j: (0, j)),   # bias tile (lane-dense)
            ],
            out_specs=pl.BlockSpec((tm, tn), lambda i, j: (i, j)),
        ),
        compiler_params=pltpu.CompilerParams(
            dimension_semantics=("parallel", "parallel"),   # megacore on v7x
            vmem_limit_bytes=48 << 20,                      # budgeted for v7x 64 MiB VMEM
        ),
        cost_estimate=cost,
    )(x_pad, wt_pad, b_pad)
    return out[:out_rows, :out_cols]


class ClassBlockPallas:
    """Pallas-backed ClassBlock. Parameter transpose/padding happens once at init."""

    def __init__(self, weight, bias, compute_dtype=jnp.float32,
                 tm_max=256, tn_max=256):
        # weight: (C, D) PyTorch Linear layout, bias: (C,)
        C, D = weight.shape
        self.C, self.D = C, D
        self.compute_dtype = compute_dtype
        self.tm_max = tm_max
        # Lane-dense N tile: multiple of 128, capped at tn_max.
        self.tn = min(tn_max, _round_up(C, 128))
        self.Cp = _round_up(C, self.tn)
        # One-time prep: transpose (C,D)->(D,C), zero-pad C dim, cast to compute dtype.
        wt = jnp.zeros((D, self.Cp), dtype=compute_dtype)
        self.wt = wt.at[:, :C].set(weight.T.astype(compute_dtype))
        b = jnp.zeros((1, self.Cp), dtype=jnp.float32)
        self.b = b.at[0, :C].set(bias.astype(jnp.float32))

    def __call__(self, x):
        # x: (B, D)
        B, D = x.shape
        assert D == self.D
        tm = min(self.tm_max, _round_up(B, 8))
        Bp = _round_up(B, tm)
        x_pad = jnp.pad(x.astype(self.compute_dtype), ((0, Bp - B), (0, 0)))
        return _class_block_pallas(
            x_pad, self.wt, self.b,
            tm=tm, tn=self.tn, out_rows=B, out_cols=self.C)


def reference_forward(x, weight, bias):
    x = jnp.where(x >= 0, x, 0.1 * x)
    return x @ weight.T + bias


if __name__ == "__main__":
    key = jax.random.PRNGKey(0)
    kx, kw, k2x, k2w = jax.random.split(key, 4)

    # --- small shapes consistent with the module ---
    B, D, C = 8, 32, 16
    x = jax.random.normal(kx, (B, D), dtype=jnp.float32)
    # weights_init_classifier: Linear.weight ~ N(0, 0.001), bias = 0
    weight = 0.001 * jax.random.normal(kw, (C, D), dtype=jnp.float32)
    bias = jnp.zeros((C,), dtype=jnp.float32)

    blk = ClassBlockPallas(weight, bias)
    out = jax.block_until_ready(blk(x))
    ref = reference_forward(x, weight, bias)
    assert out.shape == (B, C)
    assert jnp.allclose(out, ref, atol=1e-5, rtol=1e-5)

    # --- larger shape that exercises a multi-tile (2x2) grid ---
    B2, D2, C2 = 300, 256, 384
    x2 = jax.random.normal(k2x, (B2, D2), dtype=jnp.float32)
    w2 = 0.001 * jax.random.normal(k2w, (C2, D2), dtype=jnp.float32)
    b2 = jnp.zeros((C2,), dtype=jnp.float32)
    blk2 = ClassBlockPallas(w2, b2)
    out2 = jax.block_until_ready(blk2(x2))
    ref2 = reference_forward(x2, w2, b2)
    assert out2.shape == (B2, C2)
    assert jnp.allclose(out2, ref2, atol=1e-4, rtol=1e-4)

    print("KERNEL_OK")
</pallas_src>

<mosaic_0001>
module attributes {stable_mosaic.version = 11 : i64} {
  func.func @classblock_kernel(%arg0: i32, %arg1: i32, %arg2: memref<8x32xf32, #tpu.memory_space<vmem>>, %arg3: memref<32x128xf32, #tpu.memory_space<vmem>>, %arg4: memref<1x128xf32, #tpu.memory_space<vmem>>, %arg5: memref<8x128xf32, #tpu.memory_space<vmem>>) attributes {dimension_semantics = [#tpu.dimension_semantics<parallel>, #tpu.dimension_semantics<parallel>], iteration_bounds = array<i64: 1, 1>, scalar_prefetch = 0 : i64, scratch_operands = 0 : i64, tpu.core_type = #tpu.core_type<tc>, window_params = [{transform_indices = @transform_0, window_bounds = array<i64: 8, 32>}, {transform_indices = @transform_1, window_bounds = array<i64: 32, 128>}, {transform_indices = @transform_2, window_bounds = array<i64: 1, 128>}, {transform_indices = @transform_3, window_bounds = array<i64: 8, 128>}]} {
    %c0 = arith.constant 0 : index
    %c0_0 = arith.constant 0 : index
    %0 = vector.load %arg2[%c0, %c0_0] : memref<8x32xf32, #tpu.memory_space<vmem>>, vector<8x32xf32>
    %cst = arith.constant 0.000000e+00 : f32
    %1 = vector.broadcast %cst : f32 to vector<8x32xf32>
    %2 = arith.cmpf oge, %0, %1 : vector<8x32xf32>
    %cst_1 = arith.constant 1.000000e-01 : f32
    %3 = vector.broadcast %cst_1 : f32 to vector<8x32xf32>
    %4 = arith.mulf %3, %0 : vector<8x32xf32>
    %5 = arith.select %2, %0, %4 : vector<8x32xi1>, vector<8x32xf32>
    %c0_2 = arith.constant 0 : index
    %c0_3 = arith.constant 0 : index
    %6 = vector.load %arg3[%c0_2, %c0_3] : memref<32x128xf32, #tpu.memory_space<vmem>>, vector<32x128xf32>
    %cst_4 = arith.constant dense<0.000000e+00> : vector<8x128xf32>
    %7 = tpu.matmul %5, %6, %cst_4 {dimension_numbers = #tpu.dot_dimension_numbers<[1], [0], [0], [1], [0, 0, 1, 1], [], []>} : vector<8x32xf32>, vector<32x128xf32>, vector<8x128xf32> -> vector<8x128xf32>
    %c0_5 = arith.constant 0 : index
    %c0_6 = arith.constant 0 : index
    %8 = vector.load %arg4[%c0_5, %c0_6] : memref<1x128xf32, #tpu.memory_space<vmem>>, vector<1x128xf32>
    %9 = vector.broadcast %8 : vector<1x128xf32> to vector<8x128xf32>
    %10 = arith.addf %7, %9 : vector<8x128xf32>
    %c0_7 = arith.constant 0 : index
    %c0_8 = arith.constant 0 : index
    %11 = vector.load %arg5[%c0_7, %c0_8] : memref<8x128xf32, #tpu.memory_space<vmem>>, vector<8x128xf32>
    tpu.vector_store %arg5[%c0_7, %c0_8], %10 {strides = array<i32>} : memref<8x128xf32, #tpu.memory_space<vmem>>, vector<8x128xf32>,
    return
  }
  func.func @transform_0(%arg0: i32, %arg1: i32) -> (i32, i32) {
    %c0_i32 = arith.constant 0 : i32
    %c0_i32_0 = arith.constant 0 : i32
    return %arg0, %c0_i32 : i32, i32
  }
  func.func @transform_1(%arg0: i32, %arg1: i32) -> (i32, i32) {
    %c0_i32 = arith.constant 0 : i32
    %c0_i32_0 = arith.constant 0 : i32
    return %c0_i32, %arg1 : i32, i32
  }
  func.func @transform_2(%arg0: i32, %arg1: i32) -> (i32, i32) {
    %c0_i32 = arith.constant 0 : i32
    %c0_i32_0 = arith.constant 0 : i32
    return %c0_i32, %arg1 : i32, i32
  }
  func.func @transform_3(%arg0: i32, %arg1: i32) -> (i32, i32) {
    %c0_i32 = arith.constant 0 : i32
    return %arg0, %arg1 : i32, i32
  }
}

</mosaic_0001>

<bundles_post_ra>
// kernel: _class_block_pallas.1
= control target key start
LH: loop header
LB: loop body
LE: loop exit
PB: predicated region body
PF: predicated region fallthrough
CT: control target
= control target key end

     0   :  { %8 = vsyncpa [#allocation3], 0  ;;  %s222_s0 = inlined_call_operand.hbm [shape: f32[8,32], index: 0, kind: input, shape index: {}]   ;;  %s223_s1 = inlined_call_operand.hbm [shape: f32[32,128], index: 1, kind: input, shape index: {}]   ;;  %s224_s2 = inlined_call_operand.vmem [shape: f32[1,128], index: 2, kind: input, shape index: {}]   ;;  %s225_s3 = inlined_call_operand.hbm [shape: f32[8,128], index: 3, kind: output, shape index: {}]  }
   0x1   :  { %9 = vsyncpa [#allocation6], 0 }
   0x2   :  { %10 = vsyncpa [#allocation4], 0  ;;  %s16_s14 = sshll.u32 %s222_s0, 4  ;;  %s185_s15 = smov [#allocation2]   ;;  %s17_s14 = int_to_ptr.hbm [resolvable:$true] %s16_s14 }
   0x3   :  { %s18_s16 = sshll.u32 %s185_s15, 4  ;;  %s26_s19 = sshll.u32 %s223_s1, 4  ;;  %s19_s16 = int_to_ptr.vmem [resolvable:$true] %s18_s16  ;;  %s27_s19 = int_to_ptr.hbm [resolvable:$true] %s26_s19 }
   0x4   :  { %21 = dma.hbm_to_vmem [thread:$0]  %s17_s14, 128, %s19_s16, [#allocation3]  }
   0x5   :  { %s186_s20 = smov [#allocation5]   ;;  %s187_s22 = smov 128  }
   0x6   :  { %s28_s21 = sshll.u32 %s186_s20, 4  ;;  %s188_s23 = smov 8   ;;  %s29_s21 = int_to_ptr.vmem [resolvable:$true] %s28_s21 }
   0x7   :  { %34 = dma.hbm_to_vmem [thread:$0]  %s27_s19, 512, %s29_s21, [#allocation6], %s187_s22, %s187_s22, %s188_s23  }
   0x8   :  { %179 = dma.done.wait [#allocation3], 128  }
   0x9   :  { %180 = vsyncadd [#allocation3], 4294967168 }
   0xa   :  { %181 = dma.done.wait [#allocation6], 512  }
   0xb   :  { %182 = vsyncadd [#allocation6], 4294966784  ;;  %v52_v0 = vld [vmem:[#allocation5 + $0x18] sm:$0xff]  ;;  %v51_v1 = vld [vmem:[#allocation5 + $0x10] sm:$0xff]  ;;  %vm57_vm1 = vcmask 261120   ;;  %s189_s24 = smov [#allocation7]  }
   0xc   :  { %73 = vmatpush.msra.mxu0 %v52_v0  ;;  %v45_v2 = vld [vmem:[#allocation2] sm:$0xff]  ;;  %v50_v3 = vld [vmem:[#allocation5 + $0x8] sm:$0xff]  ;;  %v49_v5 = vld [vmem:[#allocation5] sm:$0xff]  ;;  %s87_s25 = sshll.u32 %s189_s24, 4  ;;  %s89_s28 = sshll.u32 %s225_s3, 4  ;;  %s88_s25 = int_to_ptr.vmem [resolvable:$true] %s87_s25  ;;  %s90_s28 = int_to_ptr.hbm [resolvable:$true] %s89_s28 }
   0xd   :  { %vm46_vm0 = vcmp.ge.f32.partialorder %v45_v2, 0.0  ;;  %v47_v4 = vmul.f32 0.1, %v45_v2  ;;  %v106_v7 = vld [vmem:[%s224_s2] ss:$0 sm:$0xff] }
   0xe   :  { %74 = vmatpush.msra.mxu0 %v51_v1 }
   0xf   :  { %v48_v6 = vsel %vm46_vm0, %v45_v2, %v47_v4 }
  0x10   :  { %75 = vmatpush.msra.mxu0 %v50_v3 }
  0x12   :  { %76 = vmatpush.msra.mxu0 %v49_v5 }
  0x13   :  { %100 = vmatmul.msk.f32.vlgmr.msra.gmra.mxu0 %vm57_vm1, %v48_v6 }
  0x90   :  { %v78_v8 = vpop.f32.mrf.mxu0 }
  0x91   :  { %v79_v9 = vadd.f32 %v106_v7, %v78_v8 }
  0x93   :  { %81 = vst [vmem:[#allocation7] sm:$0xff] %v79_v9 }
  0x94   :  { %92 = dma.vmem_to_hbm [thread:$0]  %s88_s25, 128, %s90_s28, [#allocation4]  }
  0x95   :  { %183 = dma.done.wait [#allocation4], 128  }
  0x96   :  { %184 = vsyncadd [#allocation4], 4294967168 }
  0x97   :  { %97 = vsyncpa [#allocation3], 1 }
  0x98   :  { %98 = vsyncpa [#allocation6], 1 }
  0x99   :  { %99 = vsyncpa [#allocation4], 1 }

</bundles_post_ra>
